<compile_context>
chip_gen: v7x
topology: tpu7x:2x2x1
jax: 0.10.0
libtpu: 0.0.40
codegen_flags: <defaults>
</compile_context>

<pallas_src>
import jax
import jax.numpy as jnp
from jax.experimental import pallas as pl
from jax.experimental.pallas import tpu as pltpu

LN_EPS = 1e-5


def _layernorm_kernel(x_ref, w_ref, b_ref, o_ref):
    # x_ref: (TM, H) tile of rows; w_ref/b_ref: (1, H) layernorm affine params.
    h = x_ref.shape[-1]
    inv_h = 1.0 / float(h)

    xf = x_ref[...].astype(jnp.float32)

    # Two-pass statistics in f32 (exact; avoids E[x^2]-mean^2 cancellation).
    mean = jnp.sum(xf, axis=-1, keepdims=True) * inv_h
    xc = xf - mean
    var = jnp.sum(xc * xc, axis=-1, keepdims=True) * inv_h
    inv = jax.lax.rsqrt(var + LN_EPS)

    w = w_ref[...].astype(jnp.float32)
    b = b_ref[...].astype(jnp.float32)

    # Fused affine tail.  TODO(synk): if v7x profiling shows the VALU slot
    # binding for bf16 inputs, do this tail in bf16 (stats stay f32).
    y = xc * inv * w + b
    o_ref[...] = y.astype(o_ref.dtype)


def _vmem_capacity_bytes():
    """Per-core VMEM capacity; conservative (v7x) fallback if query fails."""
    try:
        info = pltpu.get_tpu_info()
        cap = getattr(info, "vmem_capacity_bytes", None)
        if cap:
            return int(cap)
    except Exception:
        pass
    return 64 << 20  # v7x per-TensorCore; safe lower bound for v5e/v6e too


def _pick_tile_rows(rows, hidden, dtype, vmem_cap):
    """Largest row tile that:
       (a) is a multiple of the sublane granule,
       (b) keeps the double-buffered in+out pipeline PLUS the in-kernel f32
           upcast temporaries well under the per-chip VMEM capacity,
       (c) leaves >= ~4 grid steps when rows allow (pipelining / megacore),
       (d) only accepts an exact divisor of `rows` if it is still a big tile;
           otherwise uses a cdiv grid with one masked last block."""
    itemsize = jnp.dtype(dtype).itemsize
    granule = max(8, 32 // itemsize)          # 8 for f32, 16 for bf16, 32 for int8
    row_bytes = hidden * itemsize
    f32_row_bytes = hidden * 4

    # VMEM working set per row: in + out double-buffered (4x native) plus
    # ~2 materialized f32 temporaries (upcast + centered copy).
    per_row_working = 4 * row_bytes + 2 * f32_row_bytes
    budget = int(vmem_cap * 0.65)             # ~42 MiB on v7x, ~85 MiB on v5e/v6e
    max_rows_by_vmem = max(granule, budget // per_row_working)

    if rows <= granule:
        return rows                            # full-array block (exempt from granule rule)

    cap = min(1024, max_rows_by_vmem, rows)
    # Keep >= 4 grid steps when rows are large enough: restores DMA/compute
    # overlap and gives both v7x TensorCores work.
    if rows >= 4 * granule:
        cap = min(cap, max(granule, rows // 4))
    cap = max(granule, (cap // granule) * granule)

    # Prefer an exact divisor only if it stays on the roofline plateau.
    min_accept = max(cap // 2, min(256, cap))
    t = cap
    while t >= min_accept:
        if rows % t == 0:
            return t
        t -= granule

    # No big exact divisor: cdiv grid; Pallas masks the partial last block.
    return cap


def gptj_output_layer(hidden_states, ln_weight, ln_bias, *, seq_len, hidden,
                      tile_rows=None):
    """LayerNorm over the last dim + view(-1, seq_len, hidden)."""
    rows = hidden_states.size // hidden
    x2d = hidden_states.reshape(rows, hidden)
    w2d = ln_weight.reshape(1, hidden)
    b2d = ln_bias.reshape(1, hidden)

    vmem_cap = _vmem_capacity_bytes()
    if tile_rows is None:
        tile_rows = _pick_tile_rows(rows, hidden, hidden_states.dtype, vmem_cap)

    grid = (pl.cdiv(rows, tile_rows),)

    itemsize = jnp.dtype(hidden_states.dtype).itemsize
    tile_in_bytes = tile_rows * hidden * itemsize
    tile_f32_bytes = tile_rows * hidden * 4
    # in + out double-buffered, ~2 f32 temporaries, params + slack; cap with
    # headroom relative to the actual per-chip VMEM (v7x: ~48 MiB of 64).
    vmem_needed = 4 * tile_in_bytes + 2 * tile_f32_bytes + (4 << 20)
    vmem_limit = int(min(max(32 << 20, vmem_needed), int(vmem_cap * 0.75)))

    cost = pl.CostEstimate(
        flops=10 * rows * hidden,
        transcendentals=rows,                    # one rsqrt per row
        bytes_accessed=2 * rows * hidden * itemsize,
    )

    out2d = pl.pallas_call(
        _layernorm_kernel,
        out_shape=jax.ShapeDtypeStruct((rows, hidden), hidden_states.dtype),
        grid_spec=pltpu.PrefetchScalarGridSpec(
            num_scalar_prefetch=0,
            grid=grid,
            in_specs=[
                pl.BlockSpec((tile_rows, hidden), lambda i: (i, 0)),
                pl.BlockSpec((1, hidden), lambda i: (0, 0)),
                pl.BlockSpec((1, hidden), lambda i: (0, 0)),
            ],
            out_specs=pl.BlockSpec((tile_rows, hidden), lambda i: (i, 0)),
        ),
        compiler_params=pltpu.CompilerParams(
            # TODO(synk): confirm in xprof that both v7x TensorCores engage;
            # if not, switch this axis to pltpu.CORE_PARALLEL.
            dimension_semantics=("parallel",),
            vmem_limit_bytes=vmem_limit,
        ),
        cost_estimate=cost,
    )(x2d, w2d, b2d)

    # .view(-1, SEQ, HIDDEN) equivalent
    return out2d.reshape(-1, seq_len, hidden)


def reference(hidden_states, ln_weight, ln_bias, *, seq_len, hidden):
    x = hidden_states.astype(jnp.float32)
    mean = jnp.mean(x, axis=-1, keepdims=True)
    var = jnp.mean((x - mean) ** 2, axis=-1, keepdims=True)
    y = (x - mean) * jax.lax.rsqrt(var + LN_EPS)
    y = y * ln_weight.astype(jnp.float32) + ln_bias.astype(jnp.float32)
    return y.reshape(-1, seq_len, hidden)


def _run_case(key, batch, seq, hidden, dtype, atol):
    k_x, k_w, k_b = jax.random.split(key, 3)
    x = jax.random.normal(k_x, (batch, seq, hidden), dtype=jnp.float32)
    # add an outlier-ish offset to exercise the two-pass variance path
    x = (x + 3.0).astype(dtype)
    w = (1.0 + 0.1 * jax.random.normal(k_w, (hidden,), dtype=jnp.float32)).astype(dtype)
    b = (0.1 * jax.random.normal(k_b, (hidden,), dtype=jnp.float32)).astype(dtype)

    out = gptj_output_layer(x, w, b, seq_len=seq, hidden=hidden)
    out = jax.block_until_ready(out)

    ref = reference(x, w, b, seq_len=seq, hidden=hidden)
    assert out.shape == (batch, seq, hidden), out.shape
    assert jnp.allclose(out.astype(jnp.float32), ref, atol=atol, rtol=1e-2), (
        f"mismatch vs reference for {dtype} ({batch},{seq},{hidden})")


if __name__ == "__main__":
    # Small shapes consistent with the module (real GPT-J: seq=512, hidden=4096).
    key = jax.random.PRNGKey(0)
    k1, k2, k3 = jax.random.split(key, 3)

    # f32, single full-array block path
    _run_case(k1, batch=2, seq=8, hidden=128, dtype=jnp.float32, atol=1e-5)
    # f32, multi-step grid (rows=40 -> several tiles, exercises pipelining path)
    _run_case(k2, batch=2, seq=20, hidden=128, dtype=jnp.float32, atol=1e-5)
    # bf16, non-divisor row count -> cdiv grid with masked last block + f32 upcast
    _run_case(k3, batch=1, seq=24, hidden=256, dtype=jnp.bfloat16, atol=2e-2)

    print("KERNEL_OK")
</pallas_src>

<mosaic_0001>
module attributes {stable_mosaic.version = 11 : i64} {
  func.func @_layernorm_kernel(%arg0: i32, %arg1: memref<16x128xf32, #tpu.memory_space<vmem>>, %arg2: memref<1x128xf32, #tpu.memory_space<vmem>>, %arg3: memref<1x128xf32, #tpu.memory_space<vmem>>, %arg4: memref<16x128xf32, #tpu.memory_space<vmem>>) attributes {dimension_semantics = [#tpu.dimension_semantics<parallel>], iteration_bounds = array<i64: 1>, scalar_prefetch = 0 : i64, scratch_operands = 0 : i64, tpu.core_type = #tpu.core_type<tc>, window_params = [{transform_indices = @transform_0, window_bounds = array<i64: 16, 128>}, {pipeline_mode = #tpu.pipeline_mode<synchronous>, transform_indices = @transform_1, window_bounds = array<i64: 1, 128>}, {pipeline_mode = #tpu.pipeline_mode<synchronous>, transform_indices = @transform_2, window_bounds = array<i64: 1, 128>}, {transform_indices = @transform_3, window_bounds = array<i64: 16, 128>}]} {
    %c0 = arith.constant 0 : index
    %c0_0 = arith.constant 0 : index
    %0 = vector.load %arg1[%c0, %c0_0] : memref<16x128xf32, #tpu.memory_space<vmem>>, vector<16x128xf32>
    %cst = arith.constant dense<0.000000e+00> : vector<16xf32>
    %1 = vector.multi_reduction <add>, %0, %cst [1] : vector<16x128xf32> to vector<16xf32>
    %2 = vector.shape_cast %1 : vector<16xf32> to vector<16x1xf32>
    %cst_1 = arith.constant 7.812500e-03 : f32
    %3 = vector.broadcast %cst_1 : f32 to vector<16x1xf32>
    %4 = arith.mulf %2, %3 : vector<16x1xf32>
    %5 = vector.broadcast %4 : vector<16x1xf32> to vector<16x128xf32>
    %6 = arith.subf %0, %5 : vector<16x128xf32>
    %7 = arith.mulf %6, %6 : vector<16x128xf32>
    %cst_2 = arith.constant dense<0.000000e+00> : vector<16xf32>
    %8 = vector.multi_reduction <add>, %7, %cst_2 [1] : vector<16x128xf32> to vector<16xf32>
    %9 = vector.shape_cast %8 : vector<16xf32> to vector<16x1xf32>
    %cst_3 = arith.constant 7.812500e-03 : f32
    %10 = vector.broadcast %cst_3 : f32 to vector<16x1xf32>
    %11 = arith.mulf %9, %10 : vector<16x1xf32>
    %cst_4 = arith.constant 9.99999974E-6 : f32
    %12 = vector.broadcast %cst_4 : f32 to vector<16x1xf32>
    %13 = arith.addf %11, %12 : vector<16x1xf32>
    %14 = math.rsqrt %13 : vector<16x1xf32>
    %c0_5 = arith.constant 0 : index
    %c0_6 = arith.constant 0 : index
    %15 = vector.load %arg2[%c0_5, %c0_6] : memref<1x128xf32, #tpu.memory_space<vmem>>, vector<1x128xf32>
    %c0_7 = arith.constant 0 : index
    %c0_8 = arith.constant 0 : index
    %16 = vector.load %arg3[%c0_7, %c0_8] : memref<1x128xf32, #tpu.memory_space<vmem>>, vector<1x128xf32>
    %17 = vector.broadcast %14 : vector<16x1xf32> to vector<16x128xf32>
    %18 = arith.mulf %6, %17 : vector<16x128xf32>
    %19 = vector.broadcast %15 : vector<1x128xf32> to vector<16x128xf32>
    %20 = arith.mulf %18, %19 : vector<16x128xf32>
    %21 = vector.broadcast %16 : vector<1x128xf32> to vector<16x128xf32>
    %22 = arith.addf %20, %21 : vector<16x128xf32>
    %c0_9 = arith.constant 0 : index
    %c0_10 = arith.constant 0 : index
    %23 = vector.load %arg4[%c0_9, %c0_10] : memref<16x128xf32, #tpu.memory_space<vmem>>, vector<16x128xf32>
    tpu.vector_store %arg4[%c0_9, %c0_10], %22 {strides = array<i32>} : memref<16x128xf32, #tpu.memory_space<vmem>>, vector<16x128xf32>,
    return
  }
  func.func @transform_0(%arg0: i32) -> (i32, i32) {
    %c0_i32 = arith.constant 0 : i32
    %c0_i32_0 = arith.constant 0 : i32
    return %arg0, %c0_i32 : i32, i32
  }
  func.func @transform_1(%arg0: i32) -> (i32, i32) {
    %c0_i32 = arith.constant 0 : i32
    %c0_i32_0 = arith.constant 0 : i32
    %c0_i32_1 = arith.constant 0 : i32
    return %c0_i32, %c0_i32_0 : i32, i32
  }
  func.func @transform_2(%arg0: i32) -> (i32, i32) {
    %c0_i32 = arith.constant 0 : i32
    %c0_i32_0 = arith.constant 0 : i32
    %c0_i32_1 = arith.constant 0 : i32
    return %c0_i32, %c0_i32_0 : i32, i32
  }
  func.func @transform_3(%arg0: i32) -> (i32, i32) {
    %c0_i32 = arith.constant 0 : i32
    %c0_i32_0 = arith.constant 0 : i32
    return %arg0, %c0_i32 : i32, i32
  }
}

</mosaic_0001>

<bundles_post_ra>
// kernel: tpu_custom_call.1
= control target key start
LH: loop header
LB: loop body
LE: loop exit
PB: predicated region body
PF: predicated region fallthrough
CT: control target
= control target key end

     0   :  { %8 = vsyncpa [#allocation3], 0  ;;  %s208_s0 = inlined_call_operand.hbm [shape: f32[16,128], index: 0, kind: input, shape index: {}]   ;;  %s209_s1 = inlined_call_operand.vmem [shape: f32[1,128], index: 1, kind: input, shape index: {}]   ;;  %s210_s2 = inlined_call_operand.vmem [shape: f32[1,128], index: 2, kind: input, shape index: {}]   ;;  %s211_s3 = inlined_call_operand.hbm [shape: f32[16,128], index: 3, kind: output, shape index: {}]  }
   0x1   :  { %9 = vsyncpa [#allocation4], 0  ;;  %s148_s12 = smov [#allocation2]   ;;  %s100_s16 = scalar_lea.hbm %s208_s0, 256 }
   0x2   :  { %s15_s13 = sshll.u32 %s148_s12, 4  ;;  %p101_p0 = scmp.ne.s32.totalorder %s208_s0, %s100_s16  ;;  %s16_s13 = int_to_ptr.vmem [resolvable:$true] %s15_s13 }
   0x3   :  { %p104_p1 = scmp.lt.u32.totalorder %s100_s16, %s208_s0 }
   0x5   :  { %p106_p2 = pnand %p104_p1, %p101_p0 }
   0x7   :  { %109 = shalt.err (!%p106_p2)
}
   0x8   :  { %s110_s21 = scalar_lea.vmem %s16_s13, 256  ;;  %p115_p4 = scmp.lt.s32.totalorder %s16_s13, %s16_s13 }
   0x9   :  { %p111_p3 = scmp.ne.s32.totalorder %s16_s13, %s110_s21  ;;  %p116_p5 = scmp.lt.s32.totalorder %s110_s21, %s110_s21 }
   0xb   :  { %p117_p6 = por %p116_p5, %p115_p4 }
   0xd   :  { %p118_p7 = pnand %p117_p6, %p111_p3 }
   0xf   :  { %121 = shalt.err (!%p118_p7)
}
  0x10   :  { %s149_s22 = smov 128   ;;  %s150_s23 = smov 8  }
  0x11   :  { %21 = dma.hbm_to_vmem [thread:$0]  %s208_s0, 256, %s16_s13, [#allocation3], %s149_s22, %s149_s22, %s150_s23  }
  0x12   :  { %144 = dma.done.wait [#allocation3], 256  }
  0x13   :  { %145 = vsyncadd [#allocation3], 4294967040  ;;  %v29_v0 = vld [vmem:[#allocation2] sm:$0xff]  ;;  %v30_v1 = vld [vmem:[#allocation2 + $0x8] sm:$0xff]  ;;  %s151_s29 = smov [#allocation5]  }
  0x14   :  { %31 = vadd.xlane.f32.xlu0 %v29_v0  ;;  %v90_v17 = vld [vmem:[%s209_s1] ss:$0 sm:$0xff]  ;;  %s78_s30 = sshll.u32 %s151_s29, 4  ;;  %s79_s30 = int_to_ptr.vmem [resolvable:$true] %s78_s30 }
  0x15   :  { %v91_v19 = vld [vmem:[%s210_s2] ss:$0 sm:$0xff]  ;;  %s122_s4 = scalar_lea.vmem %s79_s30, 256  ;;  %p127_p9 = scmp.lt.s32.totalorder %s79_s30, %s79_s30 }
  0x16   :  { %p123_p8 = scmp.ne.s32.totalorder %s79_s30, %s122_s4  ;;  %p128_p10 = scmp.lt.s32.totalorder %s122_s4, %s122_s4 }
  0x18   :  { %33 = vadd.xlane.f32.xlu0 %v30_v1  ;;  %p129_p11 = por %p128_p10, %p127_p9 }
  0x1a   :  { %p130_p12 = pnand %p129_p11, %p123_p8 }
  0xa1   :  { %v32_v2 = vpop.xlane.xlu0 %31 }
  0xa2   :  { %v35_v3 = vmul.f32 0.0078125, %v32_v2 }
  0xa4   :  { %v37_v4 = vsub.f32 %v29_v0, %v35_v3 }
  0xa5   :  { %v34_v5 = vpop.xlane.xlu0 %33 }
  0xa6   :  { %v36_v6 = vmul.f32 0.0078125, %v34_v5  ;;  %v39_v7 = vmul.f32 %v37_v4, %v37_v4 }
  0xa8   :  { %v38_v8 = vsub.f32 %v30_v1, %v36_v6  ;;  %41 = vadd.xlane.f32.xlu1 %v39_v7 }
  0xaa   :  { %v40_v9 = vmul.f32 %v38_v8, %v38_v8 }
  0xac   :  { %43 = vadd.xlane.f32.xlu1 %v40_v9 }
 0x135   :  { %v42_v10 = vpop.xlane.xlu1 %41 }
 0x136   :  { %v45_v11 = vmul.f32 0.0078125, %v42_v10 }
 0x138   :  { %v47_v12 = vadd.f32 1e-05, %v45_v11 }
 0x139   :  { %v44_v13 = vpop.xlane.xlu1 %43 }
 0x13a   :  { %96 = vrsqrt.f32 %v47_v12  ;;  %v46_v14 = vmul.f32 0.0078125, %v44_v13 }
 0x13c   :  { %v48_v15 = vadd.f32 1e-05, %v46_v14 }
 0x13e   :  { %98 = vrsqrt.f32 %v48_v15 }
 0x144   :  { %v97_v16 = vpop.eup %96 }
 0x145   :  { %v53_v18 = vmul.f32 %v97_v16, %v37_v4 }
 0x147   :  { %v61_v20 = vmul.f32 %v90_v17, %v53_v18 }
 0x148   :  { %v99_v21 = vpop.eup %98 }
 0x149   :  { %v54_v22 = vmul.f32 %v99_v21, %v38_v8  ;;  %v69_v23 = vadd.f32 %v91_v19, %v61_v20 }
 0x14b   :  { %v62_v24 = vmul.f32 %v90_v17, %v54_v22  ;;  %71 = vst [vmem:[#allocation5] sm:$0xff] %v69_v23 }
 0x14d   :  { %v70_v25 = vadd.f32 %v91_v19, %v62_v24 }
 0x14f   :  { %72 = vst [vmem:[#allocation5 + $0x8] sm:$0xff] %v70_v25 }
 0x150   :  { %133 = shalt.err (!%p130_p12)
}
 0x151   :  { %s134_s5 = scalar_lea.hbm %s211_s3, 256 }
 0x152   :  { %p135_p13 = scmp.ne.s32.totalorder %s211_s3, %s134_s5  ;;  %p138_p0 = scmp.lt.u32.totalorder %s134_s5, %s211_s3 }
 0x154   :  { %p140_p1 = pnand %p138_p0, %p135_p13 }
 0x156   :  { %143 = shalt.err (!%p140_p1)
}
 0x157   :  { %84 = dma.vmem_to_hbm [thread:$0]  %s79_s30, 256, %s211_s3, [#allocation4], %s149_s22, %s149_s22, %s150_s23  }
 0x158   :  { %146 = dma.done.wait [#allocation4], 256  }
 0x159   :  { %147 = vsyncadd [#allocation4], 4294967040 }
 0x15a   :  { %88 = vsyncpa [#allocation3], 1 }
 0x15b   :  { %89 = vsyncpa [#allocation4], 1 }

</bundles_post_ra>
